<compile_context>
chip_gen: v7x
topology: tpu7x:2x2x1
jax: 0.10.0
libtpu: 0.0.40
codegen_flags: <defaults>
</compile_context>

<pallas_src>
import functools
import numpy as np
import jax
import jax.numpy as jnp
from jax import lax
from jax.experimental import pallas as pl
from jax.experimental.pallas import tpu as pltpu


def _round_up(x, m):
    return ((x + m - 1) // m) * m


def _gather_onehot_kernel(idx_ref, src_ref, out_ref, acc_ref, *,
                          n_nodes, tn, precision, mask_ragged_chunk):
    """One grid step: add the contribution of one src node-chunk (k) to one
    output row-tile (i) via a one-hot matmul on the MXU.

    idx_ref : VMEM (tm, 1)  int32   -- source row id for each output row (padded)
    src_ref : VMEM (tn, D)          -- node chunk k of src for batch b
    out_ref : VMEM (tm, D)          -- output tile (written on the last chunk)
    acc_ref : VMEM (tm, D) float32  -- accumulator, resident across the k axis
    """
    k = pl.program_id(2)
    nk = pl.num_programs(2)

    @pl.when(k == 0)
    def _init():
        acc_ref[...] = jnp.zeros_like(acc_ref)

    idx = idx_ref[...]                                       # (tm, 1) int32
    tm = idx.shape[0]

    # Global node id covered by each column of this chunk.
    col = k * tn + lax.broadcasted_iota(jnp.int32, (tm, tn), 1)
    onehot = (col == idx).astype(src_ref.dtype)              # (tm, tn) of 0/1
    # Out-of-range / padded indices simply produce an all-zero row (no OOB reads).

    src = src_ref[...]
    if mask_ragged_chunk:
        # Last chunk may read past N: zero those rows so stale VMEM garbage
        # (possibly NaN/Inf) can never leak through 0 * NaN in the matmul.
        row = k * tn + lax.broadcasted_iota(jnp.int32, (tn, 1), 0)
        src = jnp.where(row < n_nodes, src, jnp.zeros_like(src))

    # tm x tn x D MACs on the (otherwise idle) MXU; exact row selection since
    # the one-hot has a single 1 per row and accumulation is f32.
    acc_ref[...] += jnp.dot(onehot, src,
                            preferred_element_type=jnp.float32,
                            precision=precision)

    @pl.when(k == nk - 1)
    def _finalize():
        out_ref[...] = acc_ref[...].astype(out_ref.dtype)


def compressgnn_reconstruct(src, index, *, tm_max=512, tn_max=1024):
    """Pallas equivalent of `src.index_select(-2, index)` (node_dim == -2)."""
    *lead, N, D = src.shape
    B = int(np.prod(lead)) if lead else 1
    src3 = src.reshape(B, N, D)

    index = index.astype(jnp.int32)
    M = index.shape[0]

    # Output row tile: big enough to amortize per-grid-step overhead, lane-dense.
    tm = min(tm_max, _round_up(M, 8))
    # Node-dim chunk: bounds the on-chip src working set (v7x has 64 MiB VMEM).
    tn = N if N <= tn_max else tn_max

    n_m_tiles = pl.cdiv(M, tm)
    n_k_chunks = pl.cdiv(N, tn)

    # Pad indices so index blocks are never ragged; padded rows select row 0 and
    # their output rows (>= M) are masked out of the writeback by Pallas.
    m_pad = n_m_tiles * tm
    idx2d = jnp.pad(index, (0, m_pad - M)).reshape(m_pad, 1)

    # Full f32 contraction precision so f32 rows are reproduced exactly through
    # the MXU; bf16/f16 inputs are natively exact with f32 accumulation.
    precision = (lax.Precision.HIGHEST if src3.dtype == jnp.float32
                 else lax.Precision.DEFAULT)
    # TODO(synk): integer src dtypes wider than 24 bits are not exact through the
    # f32 MXU accumulation path of this one-hot gather.

    kernel = functools.partial(
        _gather_onehot_kernel,
        n_nodes=N, tn=tn, precision=precision,
        mask_ragged_chunk=(N % tn != 0))

    itemsize = jnp.dtype(src3.dtype).itemsize
    # Rough VMEM budget: double-buffered blocks + accumulator + one-hot temps.
    est = (2 * tn * D * itemsize + 2 * tm * D * itemsize + tm * D * 4
           + 2 * tm * 128 * 4 + 3 * tm * tn * 4)
    vmem_limit = int(min(1.25 * est, 100 * 2**20)) if est > 30 * 2**20 else None

    out = pl.pallas_call(
        kernel,
        out_shape=jax.ShapeDtypeStruct((B, M, D), src3.dtype),
        grid=(B, n_m_tiles, n_k_chunks),
        in_specs=[
            pl.BlockSpec((tm, 1), lambda b, i, k: (i, 0)),            # indices
            pl.BlockSpec((None, tn, D), lambda b, i, k: (b, k, 0)),   # src chunk
        ],
        out_specs=pl.BlockSpec((None, tm, D), lambda b, i, k: (b, i, 0)),
        scratch_shapes=[pltpu.VMEM((tm, D), jnp.float32)],
        compiler_params=pltpu.CompilerParams(
            dimension_semantics=("parallel", "parallel", "arbitrary"),
            vmem_limit_bytes=vmem_limit),
    )(idx2d, src3)

    return out.reshape(*lead, M, D)


if __name__ == "__main__":
    key = jax.random.PRNGKey(0)
    k_src, k_idx = jax.random.split(key)

    # small shapes: batch=2, nodes=64, hidden=128 ; gather 37 rows
    B, N, D, M = 2, 64, 128, 37
    src = jax.random.normal(k_src, (B, N, D), dtype=jnp.float32)
    index = jax.random.randint(k_idx, (M,), 0, N, dtype=jnp.int32)

    out = compressgnn_reconstruct(src, index)
    out = jax.block_until_ready(out)

    ref = jnp.take(src, index, axis=-2)   # == torch index_select(dim=-2)
    assert out.shape == (B, M, D), out.shape
    np.testing.assert_allclose(np.asarray(out), np.asarray(ref),
                               rtol=1e-6, atol=1e-6)

    print("KERNEL_OK")
</pallas_src>

<mosaic_0001>
module attributes {stable_mosaic.version = 11 : i64} {
  func.func @_gather_onehot_kernel(%arg0: i32, %arg1: i32, %arg2: i32, %arg3: memref<40x1xi32, #tpu.memory_space<vmem>>, %arg4: memref<1x64x128xf32, #tpu.memory_space<vmem>>, %arg5: memref<1x40x128xf32, #tpu.memory_space<vmem>>, %arg6: memref<40x128xf32, #tpu.memory_space<vmem>>) attributes {dimension_semantics = [#tpu.dimension_semantics<parallel>, #tpu.dimension_semantics<parallel>, #tpu.dimension_semantics<arbitrary>], iteration_bounds = array<i64: 2, 1, 1>, scalar_prefetch = 0 : i64, scratch_operands = 1 : i64, tpu.core_type = #tpu.core_type<tc>, window_params = [{transform_indices = @transform_0, window_bounds = array<i64: 40, 1>}, {transform_indices = @transform_1, window_bounds = array<i64: 1, 64, 128>}, {transform_indices = @transform_2, window_bounds = array<i64: 1, 40, 128>}]} {
    %c0_i32 = arith.constant 0 : i32
    %0 = arith.cmpi eq, %arg2, %c0_i32 : i32
    %1 = arith.extui %0 : i1 to i32
    %c0_i32_0 = arith.constant 0 : i32
    %2 = arith.cmpi ne, %1, %c0_i32_0 : i32
    scf.if %2 {
      %cst_11 = arith.constant 0.000000e+00 : f32
      %21 = vector.broadcast %cst_11 : f32 to vector<40x128xf32>
      %c0_12 = arith.constant 0 : index
      %c0_13 = arith.constant 0 : index
      %22 = vector.load %arg6[%c0_12, %c0_13] : memref<40x128xf32, #tpu.memory_space<vmem>>, vector<40x128xf32>
      tpu.vector_store %arg6[%c0_12, %c0_13], %21 {strides = array<i32>} : memref<40x128xf32, #tpu.memory_space<vmem>>, vector<40x128xf32>,
    } else {
    }
    %c0 = arith.constant 0 : index
    %c0_1 = arith.constant 0 : index
    %3 = vector.load %arg3[%c0, %c0_1] : memref<40x1xi32, #tpu.memory_space<vmem>>, vector<40x1xi32>
    %c64_i32 = arith.constant 64 : i32
    %4 = arith.muli %arg2, %c64_i32 : i32
    %5 = tpu.iota {dimensions = array<i32: 1>} : vector<40x64xi32>
    %6 = vector.broadcast %4 : i32 to vector<40x64xi32>
    %7 = arith.addi %6, %5 : vector<40x64xi32>
    %8 = vector.broadcast %3 : vector<40x1xi32> to vector<40x64xi32>
    %9 = arith.cmpi eq, %7, %8 : vector<40x64xi32>
    %10 = arith.extui %9 : vector<40x64xi1> to vector<40x64xi32>
    %11 = arith.sitofp %10 : vector<40x64xi32> to vector<40x64xf32>
    %c0_2 = arith.constant 0 : index
    %c0_3 = arith.constant 0 : index
    %c0_4 = arith.constant 0 : index
    %12 = vector.load %arg4[%c0_2, %c0_3, %c0_4] : memref<1x64x128xf32, #tpu.memory_space<vmem>>, vector<1x64x128xf32>
    %13 = vector.shape_cast %12 : vector<1x64x128xf32> to vector<64x128xf32>
    %c0_5 = arith.constant 0 : index
    %c0_6 = arith.constant 0 : index
    %14 = vector.load %arg6[%c0_5, %c0_6] : memref<40x128xf32, #tpu.memory_space<vmem>>, vector<40x128xf32>
    %cst = arith.constant dense<0.000000e+00> : vector<40x128xf32>
    %15 = tpu.matmul %11, %13, %cst {dimension_numbers = #tpu.dot_dimension_numbers<[1], [0], [0], [1], [0, 0, 1, 1], [], []>, precision = #tpu.contract_precision<fp32>} : vector<40x64xf32>, vector<64x128xf32>, vector<40x128xf32> -> vector<40x128xf32>
    %16 = arith.addf %14, %15 : vector<40x128xf32>
    %c0_7 = arith.constant 0 : index
    %c0_8 = arith.constant 0 : index
    %17 = vector.load %arg6[%c0_7, %c0_8] : memref<40x128xf32, #tpu.memory_space<vmem>>, vector<40x128xf32>
    tpu.vector_store %arg6[%c0_7, %c0_8], %16 {strides = array<i32>} : memref<40x128xf32, #tpu.memory_space<vmem>>, vector<40x128xf32>,
    %c0_i32_9 = arith.constant 0 : i32
    %18 = arith.cmpi eq, %arg2, %c0_i32_9 : i32
    %19 = arith.extui %18 : i1 to i32
    %c0_i32_10 = arith.constant 0 : i32
    %20 = arith.cmpi ne, %19, %c0_i32_10 : i32
    scf.if %20 {
      %c0_11 = arith.constant 0 : index
      %c0_12 = arith.constant 0 : index
      %21 = vector.load %arg6[%c0_11, %c0_12] : memref<40x128xf32, #tpu.memory_space<vmem>>, vector<40x128xf32>
      %c0_13 = arith.constant 0 : index
      %c0_14 = arith.constant 0 : index
      %c0_15 = arith.constant 0 : index
      %22 = vector.load %arg5[%c0_13, %c0_14, %c0_15] : memref<1x40x128xf32, #tpu.memory_space<vmem>>, vector<1x40x128xf32>
      %23 = vector.shape_cast %22 : vector<1x40x128xf32> to vector<40x128xf32>
      %24 = vector.shape_cast %21 : vector<40x128xf32> to vector<1x40x128xf32>
      tpu.vector_store %arg5[%c0_13, %c0_14, %c0_15], %24 {strides = array<i32>} : memref<1x40x128xf32, #tpu.memory_space<vmem>>, vector<1x40x128xf32>,
    } else {
    }
    return
  }
  func.func @transform_0(%arg0: i32, %arg1: i32, %arg2: i32) -> (i32, i32) {
    %c0_i32 = arith.constant 0 : i32
    %c0_i32_0 = arith.constant 0 : i32
    return %arg1, %c0_i32 : i32, i32
  }
  func.func @transform_1(%arg0: i32, %arg1: i32, %arg2: i32) -> (i32, i32, i32) {
    %c0_i32 = arith.constant 0 : i32
    %c0_i32_0 = arith.constant 0 : i32
    return %arg0, %arg2, %c0_i32 : i32, i32, i32
  }
  func.func @transform_2(%arg0: i32, %arg1: i32, %arg2: i32) -> (i32, i32, i32) {
    %c0_i32 = arith.constant 0 : i32
    %c0_i32_0 = arith.constant 0 : i32
    return %arg0, %arg1, %c0_i32 : i32, i32, i32
  }
}

</mosaic_0001>

<bundles_post_ra>
// kernel: tpu_custom_call.1
= control target key start
LH: loop header
LB: loop body
LE: loop exit
PB: predicated region body
PF: predicated region fallthrough
CT: control target
= control target key end

     0   :  { %7 = vsyncpa [#allocation4], 0  ;;  %s2126_s0 = inlined_call_operand.vmem [shape: s32[40,1], index: 0, kind: input, shape index: {}]   ;;  %s2127_s1 = inlined_call_operand.hbm [shape: f32[2,64,128], index: 1, kind: input, shape index: {}]   ;;  %s2128_s2 = inlined_call_operand.vmem [shape: f32[2,37,128], index: 2, kind: output, shape index: {}]  }
   0x1   :  { %9 = vsyncpa [#allocation4 + $0x1], 0  ;;  %s1727_s9 = smov 0   ;;  %s1729_s10 = smov 0  }
   0x2   :  { %s1731_s11 = smov 0   ;;  %s1733_s12 = smov 0  }
   0x3   :  { %s1735_s13 = smov 0   ;;  %s1737_s14 = smov 0  }
   0x4 LB: > { %s1144_s15 = sadd.s32 4294967295, %s1703_s14   ;;  %s34_s16 = sadd.s32 1, %s1699_s13  ;;  %s1703_s14 = sphi %s1737_s14, %s15_s14   ;;  %s1699_s13 = sphi %s1735_s13, %s2136_s13   ;;  %s1695_s12 = sphi %s1733_s12, %s2135_s12   ;;  %s1691_s11 = sphi %s1731_s11, %s2134_s11   ;;  %s1687_s10 = sphi %s1729_s10, %s2133_s10   ;;  %s1683_s9 = sphi %s1727_s9, %s2132_s9  }
   0x5   : > { %p36_p0 = scmp.ge.s32.totalorder %s34_s16, 2  ;;  %s69_s17 = sadd.s32 1, %s1691_s11 }
   0x6   : > { %p76_p1 = scmp.ne.s32.totalorder %s1691_s11, %s1687_s10  ;;  %p77_p2 = scmp.eq.s32.totalorder %s1703_s14, 0 }
   0x7   : > { %s2138_s16 = smov (%p36_p0, %s34_s16), 0  ;;  %p82_p4 = scmp.ne.s32.totalorder %s1687_s10, %s1683_s9 }
   0x8   : > { %p1763_p3 = por %p77_p2, %p76_p1  ;;  %s64_s19 = ssub.s32 %s1699_s13, %s2138_s16 }
   0x9   : > { %p83_p5 = scmp.eq.s32.totalorder %s1144_s15, 0  ;;  %p67_p6 = scmp.eq.s32.totalorder %s64_s19, 0 }
   0xa   : > { %p1566_p8 = scmp.lt.s32.totalorder %s1703_s14, 2  ;;  %s143_s22 = sand.u32 1, %s1691_s11  }
   0xb   : > { %p1770_p7 = por %p83_p5, %p82_p4  ;;  %s1177_s23 = sshll.u32 %s1699_s13, 10 }
   0xc   : > { %s1776_s21 = scalar_select %p67_p6, %s1691_s11, %s69_s17  }
   0xd   : > { %s1149_s24 = sshll.u32 %s143_s22, 6  ;;  %s1783_s27 = scalar_lea.hbm %s2127_s1, %s1177_s23 }
   0xe   : > { %s147_s28 = scalar_lea.vmem [#allocation3], %s1149_s24  ;;  %p1787_p9 = pnand %p1566_p8, %p1763_p3 }
   0xf   : > { %s156_s29 = sshll.u32 %s147_s28, 4  ;;  %s1793_s3 = scalar_lea.sflag [#allocation4], %s143_s22  ;;  %s1791_s29 = int_to_ptr.vmem [resolvable:$true] %s156_s29 }
  0x10   : > { %s1623_s4 = scalar_lea.hbm %s1783_s27, 1024  ;;  %p1625_p11 = pneg %p1787_p9 }
  0x11   : > { %p1624_p10 = scmp.ne.s32.totalorder %s1783_s27, %s1623_s4  ;;  %s1628_s7 = scalar_lea.hbm %s2127_s1, 2048 }
  0x12   : > { %p1629_p0 = scmp.lt.u32.totalorder %s1783_s27, %s2127_s1  ;;  %p1630_p1 = scmp.lt.u32.totalorder %s1628_s7, %s1623_s4 }
  0x13   : > { %p1626_p12 = pnand %p1625_p11, %p1624_p10  ;;  %p1632_p3 = scmp.lt.u32.totalorder %s1623_s4, %s1783_s27 }
  0x14   : > { %p1631_p2 = por %p1630_p1, %p1629_p0 }
  0x15   : > { %p1627_p13 = pneg %p1626_p12 }
  0x16   : > { %p1633_p4 = por %p1632_p3, %p1631_p2 }
  0x18   : > { %p1634_p5 = pnand %p1633_p4, %p1627_p13 }
  0x1a   : > { %1637 = shalt.err (!%p1634_p5)
}
  0x1b   : > { %s1638_s15 = scalar_lea.vmem %s1791_s29, 1024  ;;  %s1705_s17 = smov [#allocation3]  }
  0x1c   : > { %p1639_p6 = scmp.ne.s32.totalorder %s1791_s29, %s1638_s15  ;;  %s1643_s18 = sshll.u32 %s1705_s17, 4  ;;  %s1644_s18 = int_to_ptr.vmem [resolvable:$false] %s1643_s18 }
  0x1d   : > { %s1645_s19 = scalar_lea.vmem %s1644_s18, 2048  ;;  %p1646_p12 = scmp.lt.s32.totalorder %s1791_s29, %s1644_s18 }
  0x1e   : > { %p1641_p8 = pnand %p1639_p6, %p1625_p11  ;;  %p1647_p0 = scmp.lt.s32.totalorder %s1645_s19, %s1638_s15 }
  0x20   : > { %p1642_p10 = pneg %p1641_p8  ;;  %p1648_p1 = por %p1647_p0, %p1646_p12 }
  0x22   : > { %p1649_p2 = pnand %p1648_p1, %p1642_p10 }
  0x24   : > { %1652 = shalt.err (!%p1649_p2)
}
  0x25   : > { %s1706_s22 = smov 128   ;;  %s1707_s23 = smov 8  }
  0x26   : > { %1565 = dma.hbm_to_vmem [thread:$0]  (!%p1787_p9), %s1783_s27, 1024, %s1791_s29, %s1793_s3, %s1706_s22, %s1706_s22, %s1707_s23  }
  0x27   : > { %p1152_p11 = scmp.ge.s32.totalorder %s1703_s14, 1  ;;  %p164_p13 = scmp.lt.s32.totalorder %s1703_s14, 3 }
  0x29   : > { %p165_p3 = pnand %p1152_p11, %p164_p13 }
  0x2a   : > { %s170_s24 = sand.u32 (!%p165_p3), 1, %s1687_s10  }
  0x2b   : > { %168 = sbr.rel (%p165_p3) target bundleno = 464 (0x1d0), region = 28  ;;  %s1153_s25 = sshll.u32 (!%p165_p3), %s170_s24, 6 }
  0x2c   : > { %s171_s26 = scalar_lea.sflag (!%p165_p3), [#allocation4], %s170_s24  ;;  %s174_s28 = scalar_lea.vmem (!%p165_p3), [#allocation3], %s1153_s25 }
  0x32   : > { %1678 = dma.done.wait (%p1770_p7), %s171_s26, 1024  }
  0x33   : > { %1680 = vsyncadd (%p1770_p7), %s171_s26, 4294966272  ;;  %v1708_v0 = vmov 0   ;;  %v1709_v1 = vmov 0.0|0.0   ;;  %v230_v2 = vld [vmem:[%s2126_s0] sm:$0xff]  ;;  %v232_v3 = vld [vmem:[%s2126_s0 + $0x10] sm:$0xff]  ;;  %vm1710_vm0 = vmmov 0  }
  0x34   : > { %1621 = vset.pattern.permute.xlu0 %v1708_v0  ;;  %1622 = vset.pattern.permute.xlu1 %v1708_v0  ;;  %v231_v4 = vld [vmem:[%s2126_s0 + $0x8] sm:$0xff]  ;;  %v233_v5 = vld [vmem:[%s2126_s0 + $0x18] sm:$0xff]  ;;  %v270_v6 = vld [vmem:[%s174_s28] sm:$0xff]  ;;  %v1711_v33 = vmov 0.0   ;;  %vm283_vm1 = vcmask 523264   ;;  %p212_p7 = scmp.lt.s32.totalorder %s1695_s12, 1 }
  0x35   : > { %1478 = vmatprep.subr.bf16.mxu0 %v1709_v1  ;;  %1442 = vmatprep.subr.bf16.mxu1 %v1709_v1  ;;  %v271_v7 = vld [vmem:[%s174_s28 + $0x8] sm:$0xff]  ;;  %v300_v8 = vand.u32 4294901760, %v270_v6  ;;  %v272_v9 = vld [vmem:[%s174_s28 + $0x10] sm:$0xff]  ;;  %v273_v10 = vld [vmem:[%s174_s28 + $0x18] sm:$0xff] }
  0x36   : > { %241 = vperm.xlu0 %1621, %v230_v2   ;;  %247 = vperm.xlu1 %1622, %v232_v3   ;;  %v303_v11 = vand.u32 4294901760, %v271_v7  ;;  %v306_v12 = vand.u32 4294901760, %v272_v9  ;;  %v309_v13 = vand.u32 4294901760, %v273_v10  ;;  %v274_v14 = vld [vmem:[%s174_s28 + $0x20] sm:$0xff]  ;;  %v275_v15 = vld [vmem:[%s174_s28 + $0x28] sm:$0xff]  ;;  %v276_v16 = vld [vmem:[%s174_s28 + $0x30] sm:$0xff] }
  0x37   : > { %v1842_v17 = vsub.f32 %v270_v6, %v300_v8  ;;  %v312_v18 = vand.u32 4294901760, %v274_v14  ;;  %v277_v19 = vld [vmem:[%s174_s28 + $0x38] sm:$0xff]  ;;  %v315_v22 = vand.u32 4294901760, %v275_v15  ;;  %v318_v23 = vand.u32 4294901760, %v276_v16  ;;  %v234_v24 = vld [vmem:[%s2126_s0 + $0x20] sm:$0xff]  ;;  %1365 = vmatprep.mubr.msk.f32.mxu0 %vm1710_vm0, %v1711_v33  ;;  %1272 = vmatprep.mubr.msk.f32.mxu1 %vm1710_vm0, %v1711_v33  ;;  %s2140_s12 = smov (!%p212_p7, %s1695_s12), 1 }
  0x38   : > { %v1844_v20 = vpack.c.bf16 %v303_v11, %v300_v8  ;;  %v1846_v21 = vsub.f32 %v271_v7, %v303_v11  ;;  %v1851_v25 = vsub.f32 %v272_v9, %v306_v12  ;;  %v1853_v26 = vsub.f32 %v273_v10, %v309_v13  ;;  %s1559_s9 = smul.u32 40, %s2140_s12 }
  0x39   : > { %v1855_v27 = vsub.f32 %v274_v14, %v312_v18  ;;  %v321_v28 = vand.u32 4294901760, %v277_v19  ;;  %v1859_v29 = vpack.c.bf16 %v309_v13, %v306_v12  ;;  %v1861_v30 = vsub.f32 %v275_v15, %v315_v22 }
  0x3a   : > { %244 = vperm.xlu0 %1621, %v231_v4   ;;  %250 = vperm.xlu1 %1622, %v233_v5   ;;  %v1865_v31 = vsub.f32 %v276_v16, %v318_v23  ;;  %v425_v34 = vand.u32 4294901760, %v1842_v17  ;;  %v432_v35 = vand.u32 4294901760, %v1846_v21  ;;  %v1873_v36 = vpack.c.bf16 %v315_v22, %v312_v18  ;;  %s219_s18 = scalar_lea.vmem %s2128_s2, %s1559_s9 }
  0x3b   : > { %1480 = vmatpush3.bf16.msra.mxu0 %v1844_v20  ;;  %1444 = vmatpush3.bf16.msra.mxu1 %v1844_v20  ;;  %v1867_v32 = vsub.f32 %v277_v19, %v321_v28  ;;  %v439_v42 = vand.u32 4294901760, %v1851_v25  ;;  %v446_v43 = vand.u32 4294901760, %v1853_v26  ;;  %v1887_v44 = vpack.c.bf16 %v321_v28, %v318_v23 }
  0x3c   : > { %1481 = vmatprep.subr.bf16.mxu0 %v1709_v1  ;;  %1445 = vmatprep.subr.bf16.mxu1 %v1709_v1  ;;  %v426_v37 = vsub.f32 %v1842_v17, %v425_v34  ;;  %v433_v38 = vsub.f32 %v1846_v21, %v432_v35  ;;  %v1881_v39 = vpack.c.bf16 %v432_v35, %v425_v34  ;;  %v453_v51 = vand.u32 4294901760, %v1855_v27 }
  0x3d   : > { %v440_v46 = vsub.f32 %v1851_v25, %v439_v42  ;;  %v447_v47 = vsub.f32 %v1853_v26, %v446_v43  ;;  %v1897_v48 = vpack.c.bf16 %v446_v43, %v439_v42  ;;  %v460_v52 = vand.u32 4294901760, %v1861_v30 }
  0x3e   : > { %253 = vperm.xlu0 %1621, %v234_v24   ;;  %v427_v40 = vand.u32 4294901760, %v426_v37  ;;  %v434_v41 = vand.u32 4294901760, %v433_v38  ;;  %v454_v55 = vsub.f32 %v1855_v27, %v453_v51  ;;  %v467_v58 = vand.u32 4294901760, %v1865_v31 }
  0x3f   : > { %1483 = vmatpush3.bf16.msra.mxu0 %v1859_v29  ;;  %1447 = vmatpush3.bf16.msra.mxu1 %v1859_v29  ;;  %v441_v49 = vand.u32 4294901760, %v440_v46  ;;  %v448_v50 = vand.u32 4294901760, %v447_v47  ;;  %v1905_v54 = vpack.c.bf16 %v460_v52, %v453_v51  ;;  %v461_v56 = vsub.f32 %v1861_v30, %v460_v52 }
  0x40   : > { %1484 = vmatprep.subr.bf16.mxu0 %v1709_v1  ;;  %1448 = vmatprep.subr.bf16.mxu1 %v1709_v1  ;;  %v1891_v45 = vpack.c.bf16 %v434_v41, %v427_v40  ;;  %v455_v57 = vand.u32 4294901760, %v454_v55  ;;  %v474_v59 = vand.u32 4294901760, %v1867_v32  ;;  %v468_v62 = vsub.f32 %v1865_v31, %v467_v58 }
  0x41   : > { %v1903_v53 = vpack.c.bf16 %v448_v50, %v441_v49  ;;  %v462_v60 = vand.u32 4294901760, %v461_v56  ;;  %v1467_v5 = vpack.c.bf16 %v1846_v21, %v1842_v17  ;;  %v1470_v6 = vpack.c.bf16 %v1853_v26, %v1851_v25 }
  0x42   : > { %v1913_v61 = vpack.c.bf16 %v474_v59, %v467_v58  ;;  %v475_v63 = vsub.f32 %v1867_v32, %v474_v59  ;;  %v469_v2 = vand.u32 4294901760, %v468_v62  ;;  %v1473_v7 = vpack.c.bf16 %v1861_v30, %v1855_v27 }
  0x43   : > { %1486 = vmatpush3.bf16.msra.mxu0 %v1873_v36  ;;  %1450 = vmatpush3.bf16.msra.mxu1 %v1873_v36  ;;  %v1917_v0 = vpack.c.bf16 %v462_v60, %v455_v57  ;;  %v1476_v8 = vpack.c.bf16 %v1867_v32, %v1865_v31  ;;  %v236_v9 = vlaneseq }
  0x44   : > { %1487 = vmatprep.subr.bf16.mxu0 %v1709_v1  ;;  %1451 = vmatprep.subr.bf16.mxu1 %v1709_v1  ;;  %v476_v3 = vand.u32 4294901760, %v475_v63 }
  0x45   : > { %v237_v10 = vand.u32 127, %v236_v9 }
  0x46   : > { %v1919_v4 = vpack.c.bf16 %v476_v3, %v469_v2 }
  0x47   : > { %1489 = vmatpush3.bf16.msra.mxu0 %v1887_v44  ;;  %1453 = vmatpush3.bf16.msra.mxu1 %v1887_v44 }
  0x48   : > { %1454 = vmatprep.subr.bf16.mxu1 %v1709_v1  ;;  %1490 = vmatprep.subr.bf16.mxu0 %v1709_v1 }
  0xb5   : > { %v242_v11 = vpop.permute.xlu0 %241  ;;  %v248_v12 = vpop.permute.xlu1 %247 }
  0xb6   : > { %vm255_vm2 = vcmp.eq.s32.totalorder %v237_v10, %v242_v11  ;;  %vm257_vm3 = vcmp.eq.s32.totalorder %v237_v10, %v248_v12 }
  0xb7   : > { %v1930_v13 = vsel %vm255_vm2, 1.0, %v1711_v33  ;;  %v1933_v14 = vsel %vm257_vm3, 1.0, %v1711_v33 }
  0xb8   : > { %v285_v15 = vsel %vm283_vm1, %v1930_v13, 0  ;;  %v291_v16 = vsel %vm283_vm1, %v1933_v14, 0 }
  0xb9   : > { %v1939_v18 = vsub.f32 %v285_v15, %v285_v15  ;;  %v245_v19 = vpop.permute.xlu0 %244  ;;  %v251_v22 = vpop.permute.xlu1 %250  ;;  %v1941_v23 = vsub.f32 %v291_v16, %v291_v16 }
  0xba   : > { %vm256_vm4 = vcmp.eq.s32.totalorder %v237_v10, %v245_v19  ;;  %vm258_vm5 = vcmp.eq.s32.totalorder %v237_v10, %v251_v22 }
  0xbb   : > { %v1944_v24 = vsel %vm256_vm4, 1.0, %v1711_v33  ;;  %v1947_v28 = vsel %vm258_vm5, 1.0, %v1711_v33  ;;  %v374_v34 = vand.u32 4294901760, %v1939_v18  ;;  %v394_v42 = vand.u32 4294901760, %v1941_v23 }
  0xbc   : > { %v288_v35 = vsel %vm283_vm1, %v1944_v24, 0  ;;  %v294_v37 = vsel %vm283_vm1, %v1947_v28, 0 }
  0xbd   : > { %v1954_v38 = vsub.f32 %v288_v35, %v288_v35  ;;  %1366 = vmatmul.mubr.f32.vlgmr.msra.gmra.mrb[0].mxu0 %v374_v34  ;;  %v254_v40 = vpop.permute.xlu0 %253  ;;  %v375_v41 = vsub.f32 %v1939_v18, %v374_v34  ;;  %v1961_v43 = vsub.f32 %v294_v37, %v294_v37  ;;  %v395_v55 = vsub.f32 %v1941_v23, %v394_v42 }
  0xbe   : > { %vm259_vm6 = vcmp.eq.s32.totalorder %v237_v10, %v254_v40  ;;  %1368 = vmatprep.mubr.msk.f32.mxu0 %vm1710_vm0, %v1711_v33  ;;  %1492 = vmatpush3.bf16.msra.mxu0 %v1881_v39 }
  0xbf   : > { %v1964_v46 = vsel %vm259_vm6, 1.0, %v1711_v33  ;;  %v376_v47 = vand.u32 4294901760, %v375_v41  ;;  %v384_v49 = vand.u32 4294901760, %v1954_v38  ;;  %1493 = vmatprep.subr.bf16.mxu0 %v1709_v1  ;;  %v404_v56 = vand.u32 4294901760, %v1961_v43 }
  0xc0   : > { %v297_v50 = vsel %vm283_vm1, %v1964_v46, 0 }
  0xc1   : > { %1273 = vmatmul.mubr.f32.vlgmr.msra.gmra.mrb[0].mxu1 %v376_v47  ;;  %1369 = vmatmul.mubr.f32.gmra.mrb[2].mxu0 %v384_v49  ;;  %v385_v51 = vsub.f32 %v1954_v38, %v384_v49  ;;  %v1974_v39 = vsub.f32 %v297_v50, %v297_v50  ;;  %v405_v57 = vsub.f32 %v1961_v43, %v404_v56 }
  0xc2   : > { %1456 = vmatpush3.bf16.msra.mxu1 %v1891_v45  ;;  %1275 = vmatprep.mubr.msk.f32.mxu1 %vm1710_vm0, %v1711_v33  ;;  %v396_v45 = vand.u32 4294901760, %v395_v55 }
  0xc3   : > { %1371 = vmatprep.mubr.msk.f32.mxu0 %vm1710_vm0, %v1711_v33  ;;  %v386_v52 = vand.u32 4294901760, %v385_v51  ;;  %1457 = vmatprep.subr.bf16.mxu1 %v1709_v1  ;;  %v414_v58 = vand.u32 4294901760, %v1974_v39 }
  0xc4   : > { %1495 = vmatpush3.bf16.msra.mxu0 %v1897_v48  ;;  %v406_v48 = vand.u32 4294901760, %v405_v57 }
  0xc5   : > { %1276 = vmatmul.mubr.f32.gmra.mrb[2].mxu1 %v386_v52  ;;  %1372 = vmatmul.mubr.f32.gmra.mrb[4].mxu0 %v394_v42 }
  0xc6   : > { %1459 = vmatpush3.bf16.msra.mxu1 %v1903_v53  ;;  %1278 = vmatprep.mubr.msk.f32.mxu1 %vm1710_vm0, %v1711_v33  ;;  %v415_v53 = vsub.f32 %v1974_v39, %v414_v58 }
  0xc7   : > { %1374 = vmatprep.mubr.msk.f32.mxu0 %vm1710_vm0, %v1711_v33  ;;  %1496 = vmatprep.subr.bf16.mxu0 %v1709_v1 }
  0xc8   : > { %1460 = vmatprep.subr.bf16.mxu1 %v1709_v1  ;;  %1498 = vmatpush3.bf16.msra.mxu0 %v1905_v54  ;;  %v416_v54 = vand.u32 4294901760, %v415_v53 }
  0xc9   : > { %1279 = vmatmul.mubr.f32.gmra.mrb[4].mxu1 %v396_v45  ;;  %1375 = vmatmul.mubr.f32.gmra.mrb[6].mxu0 %v404_v56 }
  0xca   : > { %1462 = vmatpush3.bf16.msra.mxu1 %v1917_v0  ;;  %1281 = vmatprep.mubr.msk.f32.mxu1 %vm1710_vm0, %v1711_v33 }
  0xcb   : > { %1377 = vmatprep.mubr.msk.f32.mxu0 %vm1710_vm0, %v1711_v33  ;;  %1499 = vmatprep.subr.bf16.mxu0 %v1709_v1 }
  0xcc   : > { %1501 = vmatpush3.bf16.msra.mxu0 %v1913_v61  ;;  %1463 = vmatprep.subr.bf16.mxu1 %v1709_v1 }
  0xcd   : > { %1282 = vmatmul.mubr.f32.gmra.mrb[6].mxu1 %v406_v48  ;;  %1378 = vmatmul.mubr.f32.gmra.mrb[8].mxu0 %v414_v58 }
  0xce   : > { %1284 = vmatprep.mubr.msk.f32.mxu1 %vm1710_vm0, %v1711_v33  ;;  %1465 = vmatpush3.bf16.msra.mxu1 %v1919_v4 }
  0xcf   : > { %1396 = vmatprep.mubr.msk.f32.mxu0 %vm1710_vm0, %v1711_v33  ;;  %1466 = vmatprep.subr.bf16.mxu1 %v1709_v1 }
  0xd0   : > { %1502 = vmatprep.subr.bf16.mxu0 %v1709_v1 }
  0xd1   : > { %1285 = vmatmul.mubr.f32.gmra.mrb[8].mxu1 %v416_v54  ;;  %1397 = vmatmul.mubr.msk.f32.vlgmr.msra.gmra.mrb[0].mxu0 %vm283_vm1, %v1930_v13 }
  0xd2   : > { %1303 = vmatprep.mubr.msk.f32.mxu1 %vm1710_vm0, %v1711_v33  ;;  %1399 = vmatprep.mubr.msk.f32.mxu0 %vm1710_vm0, %v1711_v33 }
  0xd3   : > { %1504 = vmatpush3.bf16.msra.mxu0 %v1844_v20 }
  0xd4   : > { %1505 = vmatprep.subr.bf16.mxu0 %v1709_v1 }
  0xd5   : > { %1304 = vmatmul.mubr.msk.f32.vlgmr.msra.gmra.mrb[0].mxu1 %vm283_vm1, %v1930_v13  ;;  %1400 = vmatmul.mubr.msk.f32.gmra.mrb[2].mxu0 %vm283_vm1, %v1944_v24 }
  0xd6   : > { %1468 = vmatpush3.bf16.msra.mxu1 %v1467_v5  ;;  %1306 = vmatprep.mubr.msk.f32.mxu1 %vm1710_vm0, %v1711_v33 }
  0xd7   : > { %1402 = vmatprep.mubr.msk.f32.mxu0 %vm1710_vm0, %v1711_v33  ;;  %1469 = vmatprep.subr.bf16.mxu1 %v1709_v1 }
  0xd8   : > { %1507 = vmatpush3.bf16.msra.mxu0 %v1859_v29 }
  0xd9   : > { %1307 = vmatmul.mubr.msk.f32.gmra.mrb[2].mxu1 %vm283_vm1, %v1944_v24  ;;  %1403 = vmatmul.mubr.msk.f32.gmra.mrb[4].mxu0 %vm283_vm1, %v1933_v14 }
  0xda   : > { %1471 = vmatpush3.bf16.msra.mxu1 %v1470_v6  ;;  %1309 = vmatprep.mubr.msk.f32.mxu1 %vm1710_vm0, %v1711_v33 }
  0xdb   : > { %1405 = vmatprep.mubr.msk.f32.mxu0 %vm1710_vm0, %v1711_v33  ;;  %1508 = vmatprep.subr.bf16.mxu0 %v1709_v1 }
  0xdc   : > { %1472 = vmatprep.subr.bf16.mxu1 %v1709_v1  ;;  %1510 = vmatpush3.bf16.msra.mxu0 %v1873_v36 }
  0xdd   : > { %1310 = vmatmul.mubr.msk.f32.gmra.mrb[4].mxu1 %vm283_vm1, %v1933_v14  ;;  %1406 = vmatmul.mubr.msk.f32.gmra.mrb[6].mxu0 %vm283_vm1, %v1947_v28 }
  0xde   : > { %1474 = vmatpush3.bf16.msra.mxu1 %v1473_v7  ;;  %1312 = vmatprep.mubr.msk.f32.mxu1 %vm1710_vm0, %v1711_v33 }
  0xdf   : > { %1408 = vmatprep.mubr.msk.f32.mxu0 %vm1710_vm0, %v1711_v33  ;;  %1511 = vmatprep.subr.bf16.mxu0 %v1709_v1 }
  0xe0   : > { %1513 = vmatpush3.bf16.msra.mxu0 %v1887_v44  ;;  %1475 = vmatprep.subr.bf16.mxu1 %v1709_v1 }
  0xe1   : > { %1313 = vmatmul.mubr.msk.f32.gmra.mrb[6].mxu1 %vm283_vm1, %v1947_v28  ;;  %1409 = vmatmul.mubr.msk.f32.gmra.mrb[8].mxu0 %vm283_vm1, %v1964_v46 }
  0xe2   : > { %1315 = vmatprep.mubr.msk.f32.mxu1 %vm1710_vm0, %v1711_v33  ;;  %1477 = vmatpush3.bf16.msra.mxu1 %v1476_v8 }
  0xe3   : > { %1427 = vmatprep.mubr.msk.f32.mxu0 %vm1710_vm0, %v1711_v33 }
  0xe5   : > { %1316 = vmatmul.mubr.msk.f32.gmra.mrb[8].mxu1 %vm283_vm1, %v1964_v46  ;;  %1428 = vmatmul.mubr.msk.f32.vlgmr.msra.gmra.mrb[0].mxu0 %vm283_vm1, %v1930_v13 }
  0xe6   : > { %1334 = vmatprep.mubr.msk.f32.mxu1 %vm1710_vm0, %v1711_v33  ;;  %1430 = vmatprep.mubr.msk.f32.mxu0 %vm1710_vm0, %v1711_v33 }
  0xe9   : > { %1335 = vmatmul.mubr.f32.vlgmr.msra.gmra.mrb[0].mxu1 %v1939_v18  ;;  %1431 = vmatmul.mubr.msk.f32.gmra.mrb[2].mxu0 %vm283_vm1, %v1944_v24 }
  0xea   : > { %1337 = vmatprep.mubr.msk.f32.mxu1 %vm1710_vm0, %v1711_v33  ;;  %1433 = vmatprep.mubr.msk.f32.mxu0 %vm1710_vm0, %v1711_v33 }
  0xed   : > { %1338 = vmatmul.mubr.f32.gmra.mrb[2].mxu1 %v1954_v38  ;;  %1434 = vmatmul.mubr.msk.f32.gmra.mrb[4].mxu0 %vm283_vm1, %v1933_v14 }
  0xee   : > { %1340 = vmatprep.mubr.msk.f32.mxu1 %vm1710_vm0, %v1711_v33  ;;  %1436 = vmatprep.mubr.msk.f32.mxu0 %vm1710_vm0, %v1711_v33 }
  0xf1   : > { %1341 = vmatmul.mubr.f32.gmra.mrb[4].mxu1 %v1941_v23  ;;  %1437 = vmatmul.mubr.msk.f32.gmra.mrb[6].mxu0 %vm283_vm1, %v1947_v28 }
  0xf2   : > { %1343 = vmatprep.mubr.msk.f32.mxu1 %vm1710_vm0, %v1711_v33  ;;  %1439 = vmatprep.mubr.msk.f32.mxu0 %vm1710_vm0, %v1711_v33 }
  0xf5   : > { %1344 = vmatmul.mubr.f32.gmra.mrb[6].mxu1 %v1961_v43  ;;  %1440 = vmatmul.mubr.msk.f32.gmra.mrb[8].mxu0 %vm283_vm1, %v1964_v46 }
  0xf6   : > { %1346 = vmatprep.mubr.msk.f32.mxu1 %vm1710_vm0, %v1711_v33 }
  0xf9   : > { %1347 = vmatmul.mubr.f32.gmra.mrb[8].mxu1 %v1974_v39 }
 0x1b8   : > { %v980_v1 = vpop.f32.mrb[0].mxu0 }
 0x1b9   : > { %v1429_v17 = vpop.f32.mrb[1].mxu0 }
 0x1bc   : > { %v641_v20 = vpop.f32.mrb[0].mxu1  ;;  %v986_v21 = vpop.f32.mrb[2].mxu0 }
 0x1bd   : > { %v1514_v25 = vadd.f32 %v980_v1, %v641_v20  ;;  %v1336_v26 = vpop.f32.mrb[1].mxu1  ;;  %v1432_v27 = vpop.f32.mrb[3].mxu0 }
 0x1bf   : > { %1026 = vst [vmem:[%s219_s18] sm:$0xff] %v1514_v25 }
 0x1c0   : > { %v648_v29 = vpop.f32.mrb[2].mxu1  ;;  %v992_v30 = vpop.f32.mrb[4].mxu0 }
 0x1c1   : > { %v1515_v31 = vadd.f32 %v986_v21, %v648_v29  ;;  %v1339_v32 = vpop.f32.mrb[3].mxu1  ;;  %v1435_v33 = vpop.f32.mrb[5].mxu0 }
 0x1c3   : > { %1027 = vst [vmem:[%s219_s18 + $0x8] sm:$0xff] %v1515_v31 }
 0x1c4   : > { %v655_v36 = vpop.f32.mrb[4].mxu1  ;;  %v998_v44 = vpop.f32.mrb[6].mxu0 }
 0x1c5   : > { %v1516_v59 = vadd.f32 %v992_v30, %v655_v36  ;;  %v1342_v60 = vpop.f32.mrb[5].mxu1  ;;  %v1438_v61 = vpop.f32.mrb[7].mxu0 }
 0x1c7   : > { %1028 = vst [vmem:[%s219_s18 + $0x10] sm:$0xff] %v1516_v59 }
 0x1c8   : > { %v662_v62 = vpop.f32.mrb[6].mxu1  ;;  %v1004_v63 = vpop.f32.mrb[8].mxu0 }
 0x1c9   : > { %v1517_v0 = vadd.f32 %v998_v44, %v662_v62  ;;  %v1345_v2 = vpop.f32.mrb[7].mxu1  ;;  %v1441_v3 = vpop.f32.mrb[9].mxu0 }
 0x1cb   : > { %1029 = vst [vmem:[%s219_s18 + $0x18] sm:$0xff] %v1517_v0 }
 0x1cc   : > { %v669_v4 = vpop.f32.mrb[8].mxu1 }
 0x1cd   : > { %v1518_v5 = vadd.f32 %v1004_v63, %v669_v4  ;;  %v1348_v6 = vpop.f32.mrb[9].mxu1 }
 0x1cf   : > { %1030 = vst [vmem:[%s219_s18 + $0x20] sm:$0xff] %v1518_v5 }
 0x1d0 PF: > { %s15_s14 = sadd.s32 1, %s1703_s14   ;;  %s2132_s9 = smov %s1687_s10 }
 0x1d1   : > { %p12_p9 = scmp.ge.s32.totalorder %s15_s14, 4   ;;  %s2133_s10 = smov %s1691_s11 }
 0x1d2   : > { %s2134_s11 = smov %s1776_s21  ;;  %s2135_s12 = smov %s1699_s13 }
 0x1d3   : > { %s2136_s13 = smov %s2138_s16  ;;  %14 = sbr.rel (!%p12_p9) target bundleno = 4 (0x4), region = 79 }
 0x1da   :  { %1061 = vsyncpa [#allocation4], 1 }
 0x1db   :  { %1063 = vsyncpa [#allocation4 + $0x1], 1 }

</bundles_post_ra>
